<compile_context>
chip_gen: v6e
topology: v6e:2x2x1
jax: 0.10.0
libtpu: 0.0.40
codegen_flags: <defaults>
</compile_context>

<pallas_src>
import functools

import jax
import jax.numpy as jnp
from jax import lax
from jax.experimental import pallas as pl
from jax.experimental.pallas import tpu as pltpu

_LANE = 128
_SUBLANE = 8
_MAX_BLOCK_ROWS = 2048     # (2048, 128) f32 = 1 MiB per pipeline buffer
_NUM_CORES = 2             # v7x megacore split; sequential (and correct) on v5e/v6e


def _round_up(x, m):
    return (x + m - 1) // m * m


def _dice_bce_kernel(x_ref, t_ref, acc_ref, *, block_rows, steps_per_core,
                     valid_rows, needs_mask):
    c = pl.program_id(0)   # core-split axis ("parallel")
    i = pl.program_id(1)   # reduction axis   ("arbitrary")

    @pl.when(i == 0)
    def _():
        acc_ref[...] = jnp.zeros_like(acc_ref)

    x = x_ref[...].astype(jnp.float32)
    t = t_ref[...].astype(jnp.float32)

    if needs_mask:
        # Zero out rows past the end of the array (over-provisioned blocks are
        # index-clamped to valid data; this mask kills their contribution).
        row_start = (c * steps_per_core + i) * block_rows
        row_ids = row_start + lax.broadcasted_iota(jnp.int32, x.shape, 0)
        valid = row_ids < valid_rows
        x = jnp.where(valid, x, 0.0)
        t = jnp.where(valid, t, 0.0)

    # torch.F.binary_cross_entropy clamps the log terms at -100, which also
    # makes zero-padded (x=0, t=0) elements contribute exactly 0.
    log_x = jnp.maximum(jnp.log(x), -100.0)
    log_1mx = jnp.maximum(jnp.log(1.0 - x), -100.0)
    bce = log_1mx + t * (log_x - log_1mx)    # == t*log(x) + (1-t)*log(1-x)

    groups = block_rows // _SUBLANE

    def part(v):
        # sublane-group reduce -> (8, 128) vector partial: pure VPU vreg adds,
        # no cross-lane (XLU) work inside the loop.
        return jnp.sum(v.reshape(groups, _SUBLANE, _LANE), axis=0)

    acc_ref[0, 0] += part(x * t)   # intersection
    acc_ref[0, 1] += part(x)       # sum(inputs)
    acc_ref[0, 2] += part(t)       # sum(targets)
    acc_ref[0, 3] += part(bce)     # sum of t*log(x)+(1-t)*log(1-x) (negated later)


def dice_bce_loss(inputs, targets, smooth=1.0):
    """Pallas implementation of DiceBCELoss.forward (returns a scalar)."""
    x = jnp.reshape(inputs, (-1,))
    t = jnp.reshape(targets, (-1,))
    n = x.shape[0]

    # Lane-dense (rows, 128) view with rows a multiple of 8.  Zero padding is
    # neutral for every accumulated term; only needed when n % 1024 != 0.
    pad = (-n) % (_SUBLANE * _LANE)
    if pad:
        x = jnp.pad(x, (0, pad))
        t = jnp.pad(t, (0, pad))
    rows = (n + pad) // _LANE
    x2 = x.reshape(rows, _LANE)
    t2 = t.reshape(rows, _LANE)

    block_rows = min(_MAX_BLOCK_ROWS, rows)          # rows % 8 == 0 by construction
    num_blocks = pl.cdiv(rows, block_rows)
    num_cores = max(1, min(_NUM_CORES, num_blocks))  # don't duplicate tiny inputs
    steps_per_core = pl.cdiv(num_blocks, num_cores)
    needs_mask = num_cores * steps_per_core * block_rows != rows

    def in_map(c, i):
        # Clamp over-provisioned (core, step) pairs onto a valid block; their
        # contribution is zeroed by the in-kernel row mask.
        return (jnp.minimum(c * steps_per_core + i, num_blocks - 1), 0)

    kernel = functools.partial(
        _dice_bce_kernel,
        block_rows=block_rows,
        steps_per_core=steps_per_core,
        valid_rows=rows,
        needs_mask=needs_mask,
    )

    partials = pl.pallas_call(
        kernel,
        out_shape=jax.ShapeDtypeStruct((num_cores, 4, _SUBLANE, _LANE), jnp.float32),
        grid_spec=pltpu.PrefetchScalarGridSpec(
            num_scalar_prefetch=0,
            grid=(num_cores, steps_per_core),
            in_specs=[
                pl.BlockSpec((block_rows, _LANE), in_map),
                pl.BlockSpec((block_rows, _LANE), in_map),
            ],
            out_specs=pl.BlockSpec((1, 4, _SUBLANE, _LANE),
                                   lambda c, i: (c, 0, 0, 0)),
        ),
        compiler_params=pltpu.CompilerParams(
            dimension_semantics=("parallel", "arbitrary"),
        ),
    )(x2, t2)

    # Single final cross-lane reduce + scalar math (tiny, done once in XLA).
    sums = jnp.sum(partials, axis=(0, 2, 3))          # (4,)
    intersection, sum_x, sum_t, bce_sum = sums[0], sums[1], sums[2], sums[3]
    smooth = jnp.float32(smooth)
    dice_loss = 1.0 - (2.0 * intersection + smooth) / (sum_x + sum_t + smooth)
    bce_mean = -bce_sum / jnp.float32(n)
    return bce_mean + dice_loss


def dice_bce_loss_ref(inputs, targets, smooth=1.0):
    """Pure-JAX reference matching the PyTorch module."""
    x = jnp.reshape(inputs, (-1,)).astype(jnp.float32)
    t = jnp.reshape(targets, (-1,)).astype(jnp.float32)
    intersection = jnp.sum(x * t)
    dice_loss = 1.0 - (2.0 * intersection + smooth) / (jnp.sum(x) + jnp.sum(t) + smooth)
    log_x = jnp.maximum(jnp.log(x), -100.0)
    log_1mx = jnp.maximum(jnp.log(1.0 - x), -100.0)
    bce = jnp.mean(-(t * log_x + (1.0 - t) * log_1mx))
    return bce + dice_loss


if __name__ == "__main__":
    key = jax.random.PRNGKey(0)
    k1, k2 = jax.random.split(key)

    # NCHW shapes like a segmentation head output: probabilities in (0,1),
    # binary targets.
    shape = (2, 4, 16, 16)
    logits = jax.random.normal(k1, shape, dtype=jnp.float32)
    inputs = jax.nn.sigmoid(logits)
    targets = (jax.random.uniform(k2, shape) > 0.5).astype(jnp.float32)

    loss = jax.block_until_ready(dice_bce_loss(inputs, targets, smooth=1.0))
    ref = jax.block_until_ready(dice_bce_loss_ref(inputs, targets, smooth=1.0))

    assert jnp.allclose(loss, ref, rtol=1e-5, atol=1e-5), (loss, ref)
    print("KERNEL_OK")
</pallas_src>

<mosaic_0001>
module attributes {stable_mosaic.version = 11 : i64} {
  func.func @_dice_bce_kernel(%arg0: i32, %arg1: i32, %arg2: memref<16x128xf32, #tpu.memory_space<vmem>>, %arg3: memref<16x128xf32, #tpu.memory_space<vmem>>, %arg4: memref<1x4x8x128xf32, #tpu.memory_space<vmem>>) attributes {dimension_semantics = [#tpu.dimension_semantics<parallel>, #tpu.dimension_semantics<arbitrary>], iteration_bounds = array<i64: 1, 1>, scalar_prefetch = 0 : i64, scratch_operands = 0 : i64, tpu.core_type = #tpu.core_type<tc>, window_params = [{transform_indices = @transform_0, window_bounds = array<i64: 16, 128>}, {transform_indices = @transform_1, window_bounds = array<i64: 16, 128>}, {transform_indices = @transform_2, window_bounds = array<i64: 1, 4, 8, 128>}]} {
    %c0_i32 = arith.constant 0 : i32
    %0 = arith.cmpi eq, %arg1, %c0_i32 : i32
    %1 = arith.extui %0 : i1 to i32
    %c0_i32_0 = arith.constant 0 : i32
    %2 = arith.cmpi ne, %1, %c0_i32_0 : i32
    scf.if %2 {
      %cst_39 = arith.constant 0.000000e+00 : f32
      %49 = vector.broadcast %cst_39 : f32 to vector<1x4x8x128xf32>
      %c0_40 = arith.constant 0 : index
      %c0_41 = arith.constant 0 : index
      %c0_42 = arith.constant 0 : index
      %c0_43 = arith.constant 0 : index
      %50 = vector.load %arg4[%c0_40, %c0_41, %c0_42, %c0_43] : memref<1x4x8x128xf32, #tpu.memory_space<vmem>>, vector<1x4x8x128xf32>
      tpu.vector_store %arg4[%c0_40, %c0_41, %c0_42, %c0_43], %49 {strides = array<i32>} : memref<1x4x8x128xf32, #tpu.memory_space<vmem>>, vector<1x4x8x128xf32>,
    } else {
    }
    %c0 = arith.constant 0 : index
    %c0_1 = arith.constant 0 : index
    %3 = vector.load %arg2[%c0, %c0_1] : memref<16x128xf32, #tpu.memory_space<vmem>>, vector<16x128xf32>
    %c0_2 = arith.constant 0 : index
    %c0_3 = arith.constant 0 : index
    %4 = vector.load %arg3[%c0_2, %c0_3] : memref<16x128xf32, #tpu.memory_space<vmem>>, vector<16x128xf32>
    %5 = math.log %3 : vector<16x128xf32>
    %cst = arith.constant -1.000000e+02 : f32
    %6 = vector.broadcast %cst : f32 to vector<16x128xf32>
    %7 = arith.maximumf %5, %6 : vector<16x128xf32>
    %cst_4 = arith.constant 1.000000e+00 : f32
    %8 = vector.broadcast %cst_4 : f32 to vector<16x128xf32>
    %9 = arith.subf %8, %3 : vector<16x128xf32>
    %10 = math.log %9 : vector<16x128xf32>
    %cst_5 = arith.constant -1.000000e+02 : f32
    %11 = vector.broadcast %cst_5 : f32 to vector<16x128xf32>
    %12 = arith.maximumf %10, %11 : vector<16x128xf32>
    %13 = arith.subf %7, %12 : vector<16x128xf32>
    %14 = arith.mulf %4, %13 : vector<16x128xf32>
    %15 = arith.addf %12, %14 : vector<16x128xf32>
    %c0_6 = arith.constant 0 : index
    %c0_7 = arith.constant 0 : index
    %c0_8 = arith.constant 0 : index
    %c0_9 = arith.constant 0 : index
    %16 = vector.load %arg4[%c0_6, %c0_7, %c0_8, %c0_9] : memref<1x4x8x128xf32, #tpu.memory_space<vmem>>, vector<1x1x8x128xf32>
    %17 = vector.shape_cast %16 : vector<1x1x8x128xf32> to vector<8x128xf32>
    %18 = arith.mulf %3, %4 : vector<16x128xf32>
    %19 = vector.shape_cast %18 : vector<16x128xf32> to vector<2x8x128xf32>
    %cst_10 = arith.constant dense<0.000000e+00> : vector<8x128xf32>
    %20 = vector.multi_reduction <add>, %19, %cst_10 [0] : vector<2x8x128xf32> to vector<8x128xf32>
    %21 = arith.addf %17, %20 : vector<8x128xf32>
    %c0_11 = arith.constant 0 : index
    %c0_12 = arith.constant 0 : index
    %c0_13 = arith.constant 0 : index
    %c0_14 = arith.constant 0 : index
    %22 = vector.load %arg4[%c0_11, %c0_12, %c0_13, %c0_14] : memref<1x4x8x128xf32, #tpu.memory_space<vmem>>, vector<1x1x8x128xf32>
    %23 = vector.shape_cast %22 : vector<1x1x8x128xf32> to vector<8x128xf32>
    %24 = vector.shape_cast %21 : vector<8x128xf32> to vector<1x1x8x128xf32>
    tpu.vector_store %arg4[%c0_11, %c0_12, %c0_13, %c0_14], %24 {strides = array<i32>} : memref<1x4x8x128xf32, #tpu.memory_space<vmem>>, vector<1x1x8x128xf32>,
    %c0_15 = arith.constant 0 : index
    %c1 = arith.constant 1 : index
    %c0_16 = arith.constant 0 : index
    %c0_17 = arith.constant 0 : index
    %25 = vector.load %arg4[%c0_15, %c1, %c0_16, %c0_17] : memref<1x4x8x128xf32, #tpu.memory_space<vmem>>, vector<1x1x8x128xf32>
    %26 = vector.shape_cast %25 : vector<1x1x8x128xf32> to vector<8x128xf32>
    %27 = vector.shape_cast %3 : vector<16x128xf32> to vector<2x8x128xf32>
    %cst_18 = arith.constant dense<0.000000e+00> : vector<8x128xf32>
    %28 = vector.multi_reduction <add>, %27, %cst_18 [0] : vector<2x8x128xf32> to vector<8x128xf32>
    %29 = arith.addf %26, %28 : vector<8x128xf32>
    %c0_19 = arith.constant 0 : index
    %c1_20 = arith.constant 1 : index
    %c0_21 = arith.constant 0 : index
    %c0_22 = arith.constant 0 : index
    %30 = vector.load %arg4[%c0_19, %c1_20, %c0_21, %c0_22] : memref<1x4x8x128xf32, #tpu.memory_space<vmem>>, vector<1x1x8x128xf32>
    %31 = vector.shape_cast %30 : vector<1x1x8x128xf32> to vector<8x128xf32>
    %32 = vector.shape_cast %29 : vector<8x128xf32> to vector<1x1x8x128xf32>
    tpu.vector_store %arg4[%c0_19, %c1_20, %c0_21, %c0_22], %32 {strides = array<i32>} : memref<1x4x8x128xf32, #tpu.memory_space<vmem>>, vector<1x1x8x128xf32>,
    %c0_23 = arith.constant 0 : index
    %c2 = arith.constant 2 : index
    %c0_24 = arith.constant 0 : index
    %c0_25 = arith.constant 0 : index
    %33 = vector.load %arg4[%c0_23, %c2, %c0_24, %c0_25] : memref<1x4x8x128xf32, #tpu.memory_space<vmem>>, vector<1x1x8x128xf32>
    %34 = vector.shape_cast %33 : vector<1x1x8x128xf32> to vector<8x128xf32>
    %35 = vector.shape_cast %4 : vector<16x128xf32> to vector<2x8x128xf32>
    %cst_26 = arith.constant dense<0.000000e+00> : vector<8x128xf32>
    %36 = vector.multi_reduction <add>, %35, %cst_26 [0] : vector<2x8x128xf32> to vector<8x128xf32>
    %37 = arith.addf %34, %36 : vector<8x128xf32>
    %c0_27 = arith.constant 0 : index
    %c2_28 = arith.constant 2 : index
    %c0_29 = arith.constant 0 : index
    %c0_30 = arith.constant 0 : index
    %38 = vector.load %arg4[%c0_27, %c2_28, %c0_29, %c0_30] : memref<1x4x8x128xf32, #tpu.memory_space<vmem>>, vector<1x1x8x128xf32>
    %39 = vector.shape_cast %38 : vector<1x1x8x128xf32> to vector<8x128xf32>
    %40 = vector.shape_cast %37 : vector<8x128xf32> to vector<1x1x8x128xf32>
    tpu.vector_store %arg4[%c0_27, %c2_28, %c0_29, %c0_30], %40 {strides = array<i32>} : memref<1x4x8x128xf32, #tpu.memory_space<vmem>>, vector<1x1x8x128xf32>,
    %c0_31 = arith.constant 0 : index
    %c3 = arith.constant 3 : index
    %c0_32 = arith.constant 0 : index
    %c0_33 = arith.constant 0 : index
    %41 = vector.load %arg4[%c0_31, %c3, %c0_32, %c0_33] : memref<1x4x8x128xf32, #tpu.memory_space<vmem>>, vector<1x1x8x128xf32>
    %42 = vector.shape_cast %41 : vector<1x1x8x128xf32> to vector<8x128xf32>
    %43 = vector.shape_cast %15 : vector<16x128xf32> to vector<2x8x128xf32>
    %cst_34 = arith.constant dense<0.000000e+00> : vector<8x128xf32>
    %44 = vector.multi_reduction <add>, %43, %cst_34 [0] : vector<2x8x128xf32> to vector<8x128xf32>
    %45 = arith.addf %42, %44 : vector<8x128xf32>
    %c0_35 = arith.constant 0 : index
    %c3_36 = arith.constant 3 : index
    %c0_37 = arith.constant 0 : index
    %c0_38 = arith.constant 0 : index
    %46 = vector.load %arg4[%c0_35, %c3_36, %c0_37, %c0_38] : memref<1x4x8x128xf32, #tpu.memory_space<vmem>>, vector<1x1x8x128xf32>
    %47 = vector.shape_cast %46 : vector<1x1x8x128xf32> to vector<8x128xf32>
    %48 = vector.shape_cast %45 : vector<8x128xf32> to vector<1x1x8x128xf32>
    tpu.vector_store %arg4[%c0_35, %c3_36, %c0_37, %c0_38], %48 {strides = array<i32>} : memref<1x4x8x128xf32, #tpu.memory_space<vmem>>, vector<1x1x8x128xf32>,
    return
  }
  func.func @transform_0(%arg0: i32, %arg1: i32) -> (i32, i32) {
    %c1_i32 = arith.constant 1 : i32
    %0 = arith.muli %arg0, %c1_i32 : i32
    %1 = arith.addi %0, %arg1 : i32
    %c0_i32 = arith.constant 0 : i32
    %2 = arith.minsi %1, %c0_i32 : i32
    %c0_i32_0 = arith.constant 0 : i32
    %c0_i32_1 = arith.constant 0 : i32
    return %2, %c0_i32_0 : i32, i32
  }
  func.func @transform_1(%arg0: i32, %arg1: i32) -> (i32, i32) {
    %c1_i32 = arith.constant 1 : i32
    %0 = arith.muli %arg0, %c1_i32 : i32
    %1 = arith.addi %0, %arg1 : i32
    %c0_i32 = arith.constant 0 : i32
    %2 = arith.minsi %1, %c0_i32 : i32
    %c0_i32_0 = arith.constant 0 : i32
    %c0_i32_1 = arith.constant 0 : i32
    return %2, %c0_i32_0 : i32, i32
  }
  func.func @transform_2(%arg0: i32, %arg1: i32) -> (i32, i32, i32, i32) {
    %c0_i32 = arith.constant 0 : i32
    %c0_i32_0 = arith.constant 0 : i32
    %c0_i32_1 = arith.constant 0 : i32
    %c0_i32_2 = arith.constant 0 : i32
    return %arg0, %c0_i32, %c0_i32_0, %c0_i32_1 : i32, i32, i32, i32
  }
}

</mosaic_0001>

<bundles_post_ra>
// kernel: tpu_custom_call.1
= control target key start
LH: loop header
LB: loop body
LE: loop exit
PB: predicated region body
PF: predicated region fallthrough
CT: control target
= control target key end

     0   :  { %7 = vsyncpa [#allocation3], 0  ;;  %s253_s0 = inlined_call_operand.hbm [shape: f32[16,128], index: 0, kind: input, shape index: {}]   ;;  %s254_s1 = inlined_call_operand.hbm [shape: f32[16,128], index: 1, kind: input, shape index: {}]   ;;  %s255_s2 = inlined_call_operand.hbm [shape: f32[1,4,8,128], index: 2, kind: output, shape index: {}]  }
   0x1   :  { %8 = vsyncpa [#allocation6], 0 }
   0x2   :  { %9 = vsyncpa [#allocation4], 0  ;;  %s215_s9 = smov [#allocation2]  }
   0x3   :  { %s21_s10 = sshll.u32 %s215_s9, 4  ;;  %s22_s10 = int_to_ptr.vmem [resolvable:$true] %s21_s10 }
   0x4   :  { %s157_s11 = scalar_lea.vmem %s22_s10, 256  ;;  %p162_p1 = scmp.lt.s32.totalorder %s22_s10, %s22_s10 }
   0x5   :  { %p158_p0 = scmp.ne.s32.totalorder %s22_s10, %s157_s11  ;;  %p163_p2 = scmp.lt.s32.totalorder %s157_s11, %s157_s11 }
   0x7   :  { %p164_p3 = por %p163_p2, %p162_p1 }
   0x9   :  { %p165_p4 = pnand %p164_p3, %p158_p0 }
   0xb   :  { %168 = shalt.err (!%p165_p4)
}
   0xc   :  { %s216_s12 = smov 128   ;;  %s217_s13 = smov 8  }
   0xd   :  { %27 = dma.hbm_to_vmem [thread:$0]  %s253_s0, 256, %s22_s10, [#allocation3], %s216_s12, %s216_s12, %s217_s13  }
   0xe   :  { %s218_s16 = smov [#allocation5]  }
   0xf   :  { %s39_s17 = sshll.u32 %s218_s16, 4  ;;  %s40_s17 = int_to_ptr.vmem [resolvable:$true] %s39_s17 }
  0x10   :  { %s177_s18 = scalar_lea.vmem %s40_s17, 256  ;;  %p182_p6 = scmp.lt.s32.totalorder %s40_s17, %s40_s17 }
  0x11   :  { %p178_p5 = scmp.ne.s32.totalorder %s40_s17, %s177_s18  ;;  %p183_p7 = scmp.lt.s32.totalorder %s177_s18, %s177_s18 }
  0x13   :  { %p184_p8 = por %p183_p7, %p182_p6 }
  0x15   :  { %p185_p9 = pnand %p184_p8, %p178_p5 }
  0x17   :  { %188 = shalt.err (!%p185_p9)
}
  0x18   :  { %45 = dma.hbm_to_vmem [thread:$0]  %s254_s1, 256, %s40_s17, [#allocation6], %s216_s12, %s216_s12, %s217_s13  }
  0x19   :  { %209 = dma.done.wait [#allocation3], 256  }
  0x1a   :  { %210 = vsyncadd [#allocation3], 4294967040 }
  0x1b   :  { %211 = dma.done.wait [#allocation6], 256  }
  0x1c   :  { %212 = vsyncadd [#allocation6], 4294967040  ;;  %v68_v0 = vld [vmem:[#allocation2] sm:$0xff]  ;;  %v69_v1 = vld [vmem:[#allocation2 + $0x8] sm:$0xff]  ;;  %s219_s0 = smov [#allocation7]  }
  0x1d   :  { %v70_v2 = vld [vmem:[#allocation5] sm:$0xff]  ;;  %v71_v3 = vld [vmem:[#allocation5 + $0x8] sm:$0xff]  ;;  %141 = vlog2.f32 %v68_v0  ;;  %v100_v5 = vadd.f32 %v69_v1, %v68_v0  ;;  %v78_v6 = vsub.f32 1.0, %v68_v0  ;;  %v79_v9 = vsub.f32 1.0, %v69_v1  ;;  %s118_s1 = sshll.u32 %s219_s0, 4  ;;  %s119_s1 = int_to_ptr.vmem [resolvable:$true] %s118_s1 }
  0x1e   :  { %v93_v4 = vmul.f32 %v70_v2, %v68_v0  ;;  %143 = vlog2.f32 %v69_v1  ;;  %v94_v7 = vmul.f32 %v71_v3, %v69_v1  ;;  %v105_v8 = vadd.f32 %v71_v3, %v70_v2  ;;  %s189_s21 = scalar_lea.vmem %s119_s1, 512  ;;  %p194_p11 = scmp.lt.s32.totalorder %s119_s1, %s119_s1 }
  0x1f   :  { %145 = vlog2.f32 %v78_v6  ;;  %102 = vst [vmem:[#allocation7 + $0x8] sm:$0xff] %v100_v5  ;;  %p190_p10 = scmp.ne.s32.totalorder %s119_s1, %s189_s21  ;;  %p195_p12 = scmp.lt.s32.totalorder %s189_s21, %s189_s21 }
  0x20   :  { %v95_v10 = vadd.f32 %v94_v7, %v93_v4  ;;  %147 = vlog2.f32 %v79_v9  ;;  %107 = vst [vmem:[#allocation7 + $0x10] sm:$0xff] %v105_v8 }
  0x21   :  { %p196_p13 = por %p195_p12, %p194_p11 }
  0x22   :  { %97 = vst [vmem:[#allocation7] sm:$0xff] %v95_v10 }
  0x23   :  { %p197_p0 = pnand %p196_p13, %p190_p10 }
  0x2a   :  { %v142_v11 = vpop.eup %141 }
  0x2b   :  { %v144_v12 = vpop.eup %143  ;;  %v73_v13 = vmul.f32 0.6931472, %v142_v11 }
  0x2c   :  { %v146_v14 = vpop.eup %145  ;;  %v75_v15 = vmul.f32 0.6931472, %v144_v12 }
  0x2d   :  { %v148_v16 = vpop.eup %147  ;;  %v76_v17 = vmax.f32 %v73_v13, -100.0  ;;  %v81_v18 = vmul.f32 0.6931472, %v146_v14 }
  0x2e   :  { %v77_v19 = vmax.f32 %v75_v15, -100.0  ;;  %v83_v20 = vmul.f32 0.6931472, %v148_v16 }
  0x2f   :  { %v84_v21 = vmax.f32 %v81_v18, -100.0 }
  0x30   :  { %v85_v22 = vmax.f32 %v83_v20, -100.0 }
  0x31   :  { %v86_v23 = vsub.f32 %v76_v17, %v84_v21 }
  0x32   :  { %v87_v24 = vsub.f32 %v77_v19, %v85_v22 }
  0x33   :  { %v88_v25 = vmul.f32 %v86_v23, %v70_v2 }
  0x34   :  { %v89_v26 = vmul.f32 %v87_v24, %v71_v3 }
  0x35   :  { %v90_v27 = vadd.f32 %v88_v25, %v84_v21 }
  0x36   :  { %v91_v28 = vadd.f32 %v89_v26, %v85_v22 }
  0x38   :  { %v110_v29 = vadd.f32 %v91_v28, %v90_v27 }
  0x3a   :  { %112 = vst [vmem:[#allocation7 + $0x18] sm:$0xff] %v110_v29 }
  0x3b   :  { %200 = shalt.err (!%p197_p0)
}
  0x3c   :  { %124 = dma.vmem_to_hbm [thread:$0]  %s119_s1, 512, %s255_s2, [#allocation4], %s216_s12, %s216_s12, %s217_s13  }
  0x3d   :  { %213 = dma.done.wait [#allocation4], 512  }
  0x3e   :  { %214 = vsyncadd [#allocation4], 4294966784 }
  0x3f   :  { %128 = vsyncpa [#allocation3], 1 }
  0x40   :  { %129 = vsyncpa [#allocation6], 1 }
  0x41   :  { %130 = vsyncpa [#allocation4], 1 }

</bundles_post_ra>
